<compile_context>
chip_gen: v7x
topology: tpu7x:2x2x1
jax: 0.10.0
libtpu: 0.0.40
codegen_flags: <defaults>
</compile_context>

<pallas_src>
import jax
import jax.numpy as jnp
from jax.experimental import pallas as pl
from jax.experimental.pallas import tpu as pltpu


def _round_up(x, m):
    return (x + m - 1) // m * m


def neural_lm_kernel(idx_ref, embed_ref, w1_ref, b1_ref, w2_ref, b2_ref,
                     out_ref, feat_ref, h_ref):
    """One (batch-tile i, vocab-tile j) grid step.

    idx_ref   : SMEM (B_pad*W,) int32     token ids (scalar prefetch, flattened)
    embed_ref : VMEM (V_pad, E_pad) f32   embedding table (resident)
    w1_ref    : VMEM (W*E_pad, H_pad) bf16
    b1_ref    : VMEM (1, H_pad) f32
    w2_ref    : VMEM (H_pad, TN) bf16     vocab tile of fc2 weights (streamed)
    b2_ref    : VMEM (1, TN) f32
    out_ref   : VMEM (TB, TN) f32
    feat_ref  : VMEM (TB, W*E_pad) f32    gathered feature slab (scratch)
    h_ref     : VMEM (TB, H_pad) bf16     cached fc1+ReLU activations (scratch)
    """
    i = pl.program_id(0)                       # batch-tile index
    j = pl.program_id(1)                       # vocab-tile index
    TB = out_ref.shape[0]
    E = embed_ref.shape[1]                     # padded embed dim (lane-aligned)
    W = w1_ref.shape[0] // E                   # window size

    # Gather + fc1 + ReLU only once per batch tile (first vocab tile); the
    # bf16 hidden activations persist in VMEM scratch across the j axis.
    @pl.when(j == 0)
    def _():
        # --- embedding gather: one dynamic row-slice per (row, slot) token ---
        # TODO(synk): for large batch tiles / vocabularies, replace the
        # unrolled row loop with a manual DMA gather (memory_space=pl.ANY +
        # make_async_copy) so only the needed rows ever leave HBM.
        for b in range(TB):
            row = i * TB + b
            for w in range(W):
                tok = idx_ref[row * W + w]                   # scalar SMEM read
                feat_ref[pl.ds(b, 1), pl.ds(w * E, E)] = (
                    embed_ref[pl.ds(tok, 1), :])

        feat = feat_ref[...].astype(jnp.bfloat16)            # (TB, W*E_pad)

        # --- fc1 + ReLU: bf16 MXU matmul, f32 accumulate, f32 VPU epilogue ---
        h = jnp.dot(feat, w1_ref[...], preferred_element_type=jnp.float32)
        h = jnp.maximum(h + b1_ref[...], 0.0)
        h_ref[...] = h.astype(jnp.bfloat16)

    # --- fc2 on the current vocab tile ---------------------------------------
    out_ref[...] = (
        jnp.dot(h_ref[...], w2_ref[...], preferred_element_type=jnp.float32)
        + b2_ref[...]
    )


def neural_lm_forward(x, params, *, vocab_tile=512):
    """x: (B, W) integer token indices. params: f32 dict (JAX layout, W as (in, out))."""
    embed = params["embed"]
    w1, b1 = params["w1"], params["b1"]
    w2, b2 = params["w2"], params["b2"]

    B, W = x.shape
    V, E = embed.shape
    H = w1.shape[1]

    # Lane-aligned padded dims (128 lanes; 8 sublanes for the batch axis).
    E_pad = _round_up(E, 128)
    H_pad = _round_up(H, 128)
    V_pad = _round_up(V, 128)
    B_pad = _round_up(B, 8) if B <= 128 else _round_up(B, 128)
    TB = B_pad if B_pad <= 128 else 128
    TN = vocab_tile if V_pad % vocab_tile == 0 else 128      # V_pad % 128 == 0
    nb, nv = B_pad // TB, V_pad // TN

    # Zero-padded params.  Big weights go to bf16 (f32 accumulation in-kernel);
    # embedding table and biases stay f32.  w1's K rows are re-spaced so window
    # slot w starts at offset w*E_pad, matching the padded feature slab layout.
    embed_p = jnp.zeros((V_pad, E_pad), jnp.float32).at[:V, :E].set(embed)
    w1_p = jnp.zeros((W * E_pad, H_pad), jnp.bfloat16)
    for w in range(W):
        w1_p = w1_p.at[w * E_pad:w * E_pad + E, :H].set(
            w1[w * E:(w + 1) * E, :].astype(jnp.bfloat16))
    b1_p = jnp.zeros((1, H_pad), jnp.float32).at[:, :H].set(b1)
    w2_p = jnp.zeros((H_pad, V_pad), jnp.bfloat16).at[:H, :V].set(
        w2.astype(jnp.bfloat16))
    b2_p = jnp.zeros((1, V_pad), jnp.float32).at[:, :V].set(b2)
    idx_p = jnp.zeros((B_pad * W,), jnp.int32).at[:B * W].set(
        x.astype(jnp.int32).reshape(-1))

    grid_spec = pltpu.PrefetchScalarGridSpec(
        num_scalar_prefetch=1,               # token ids -> SMEM (scalar path)
        grid=(nb, nv),
        in_specs=[
            pl.BlockSpec((V_pad, E_pad), lambda i, j, idx: (0, 0)),      # embed
            pl.BlockSpec((W * E_pad, H_pad), lambda i, j, idx: (0, 0)),  # w1
            pl.BlockSpec((1, H_pad), lambda i, j, idx: (0, 0)),          # b1
            pl.BlockSpec((H_pad, TN), lambda i, j, idx: (0, j)),         # w2 tile
            pl.BlockSpec((1, TN), lambda i, j, idx: (0, j)),             # b2 tile
        ],
        out_specs=pl.BlockSpec((TB, TN), lambda i, j, idx: (i, j)),
        scratch_shapes=[
            pltpu.VMEM((TB, W * E_pad), jnp.float32),    # gathered features
            pltpu.VMEM((TB, H_pad), jnp.bfloat16),       # cached fc1+ReLU acts
        ],
    )

    out = pl.pallas_call(
        neural_lm_kernel,
        out_shape=jax.ShapeDtypeStruct((B_pad, V_pad), jnp.float32),
        grid_spec=grid_spec,
        compiler_params=pltpu.CompilerParams(
            # Vocab axis carries the cached hidden state -> must stay on one
            # core and iterate in order ("arbitrary"); batch axis is parallel.
            dimension_semantics=("parallel", "arbitrary"),
            vmem_limit_bytes=32 * 1024 * 1024,
        ),
    )(idx_p, embed_p, w1_p, b1_p, w2_p, b2_p)

    return out[:B, :V]


def init_params(key, vocab_size, embed_dim, hidden_dim, window_size):
    """Deterministic synthetic init matching the PyTorch module's shapes."""
    k = jax.random.split(key, 5)
    in1 = window_size * embed_dim
    return {
        # nn.Embedding(vocab_size, embed_dim): N(0, 1)
        "embed": jax.random.normal(k[0], (vocab_size, embed_dim), jnp.float32),
        # nn.Linear(window_size*embed_dim, hidden_dim), stored transposed (in, out)
        "w1": jax.random.uniform(
            k[1], (in1, hidden_dim), jnp.float32, -1.0 / in1 ** 0.5, 1.0 / in1 ** 0.5
        ),
        "b1": jax.random.uniform(
            k[2], (1, hidden_dim), jnp.float32, -1.0 / in1 ** 0.5, 1.0 / in1 ** 0.5
        ),
        # nn.Linear(hidden_dim, vocab_size), stored transposed (in, out)
        "w2": jax.random.uniform(
            k[3], (hidden_dim, vocab_size), jnp.float32,
            -1.0 / hidden_dim ** 0.5, 1.0 / hidden_dim ** 0.5
        ),
        "b2": jax.random.uniform(
            k[4], (1, vocab_size), jnp.float32,
            -1.0 / hidden_dim ** 0.5, 1.0 / hidden_dim ** 0.5
        ),
    }


def reference_forward(x, params):
    """Pure-JAX reference with the same bf16-weight / f32-accumulate math."""
    feat = params["embed"][x].reshape(x.shape[0], -1).astype(jnp.bfloat16)
    w1 = params["w1"].astype(jnp.bfloat16)
    w2 = params["w2"].astype(jnp.bfloat16)
    h = jnp.dot(feat, w1, preferred_element_type=jnp.float32) + params["b1"]
    h = jnp.maximum(h, 0.0)
    return (jnp.dot(h.astype(jnp.bfloat16), w2,
                    preferred_element_type=jnp.float32) + params["b2"])


if __name__ == "__main__":
    embed_dim = 10
    hidden_dim = 20
    window_size = 2
    corpus = (
        "\nThe cat is running. The dog is barking. A cat jumps high.\n"
        "The dog runs fast. Cats and dogs play together.\n"
    ).lower().split()
    vocab = sorted(set(corpus))          # deterministic ordering
    vocab_size = len(vocab)              # 16

    key = jax.random.PRNGKey(0)
    pkey, xkey = jax.random.split(key)
    params = init_params(pkey, vocab_size, embed_dim, hidden_dim, window_size)

    batch = 4
    x = jax.random.randint(xkey, (batch, window_size), 0, vocab_size, jnp.int32)

    out = neural_lm_forward(x, params)
    out = jax.block_until_ready(out)

    ref = reference_forward(x, params)
    assert out.shape == (batch, vocab_size)
    assert jnp.allclose(out, ref, atol=1e-3, rtol=1e-3), (
        float(jnp.max(jnp.abs(out - ref)))
    )
    print("KERNEL_OK")
</pallas_src>

<mosaic_0001>
module attributes {stable_mosaic.version = 11 : i64} {
  func.func @neural_lm_kernel(%arg0: i32, %arg1: i32, %arg2: memref<16xi32, #tpu.memory_space<smem>>, %arg3: memref<128x128xf32, #tpu.memory_space<vmem>>, %arg4: memref<256x128xbf16, #tpu.memory_space<vmem>>, %arg5: memref<1x128xf32, #tpu.memory_space<vmem>>, %arg6: memref<128x128xbf16, #tpu.memory_space<vmem>>, %arg7: memref<1x128xf32, #tpu.memory_space<vmem>>, %arg8: memref<8x128xf32, #tpu.memory_space<vmem>>, %arg9: memref<8x256xf32, #tpu.memory_space<vmem>>, %arg10: memref<8x128xbf16, #tpu.memory_space<vmem>>) attributes {dimension_semantics = [#tpu.dimension_semantics<parallel>, #tpu.dimension_semantics<arbitrary>], iteration_bounds = array<i64: 1, 1>, scalar_prefetch = 1 : i64, scratch_operands = 2 : i64, tpu.core_type = #tpu.core_type<tc>, window_params = [{pipeline_mode = #tpu.pipeline_mode<synchronous>, transform_indices = @transform_0, window_bounds = array<i64: 128, 128>}, {pipeline_mode = #tpu.pipeline_mode<synchronous>, transform_indices = @transform_1, window_bounds = array<i64: 256, 128>}, {pipeline_mode = #tpu.pipeline_mode<synchronous>, transform_indices = @transform_2, window_bounds = array<i64: 1, 128>}, {transform_indices = @transform_3, window_bounds = array<i64: 128, 128>}, {transform_indices = @transform_4, window_bounds = array<i64: 1, 128>}, {transform_indices = @transform_5, window_bounds = array<i64: 8, 128>}]} {
    %c0_i32 = arith.constant 0 : i32
    %0 = arith.cmpi eq, %arg1, %c0_i32 : i32
    %1 = arith.extui %0 : i1 to i32
    %c0_i32_0 = arith.constant 0 : i32
    %2 = arith.cmpi ne, %1, %c0_i32_0 : i32
    scf.if %2 {
      %c8_i32 = arith.constant 8 : i32
      %10 = arith.muli %arg0, %c8_i32 : i32
      %c0_i32_8 = arith.constant 0 : i32
      %11 = arith.addi %10, %c0_i32_8 : i32
      %c2_i32 = arith.constant 2 : i32
      %12 = arith.muli %11, %c2_i32 : i32
      %c0_i32_9 = arith.constant 0 : i32
      %13 = arith.addi %12, %c0_i32_9 : i32
      %14 = arith.index_cast %13 : i32 to index
      %15 = memref.load %arg2[%14] : memref<16xi32, #tpu.memory_space<smem>>
      %16 = arith.index_cast %15 : i32 to index
      %c0_10 = arith.constant 0 : index
      %17 = vector.load %arg3[%16, %c0_10] : memref<128x128xf32, #tpu.memory_space<vmem>>, vector<1x128xf32>
      %c0_11 = arith.constant 0 : index
      %c0_12 = arith.constant 0 : index
      %18 = vector.load %arg9[%c0_11, %c0_12] : memref<8x256xf32, #tpu.memory_space<vmem>>, vector<1x128xf32>
      tpu.vector_store %arg9[%c0_11, %c0_12], %17 {strides = array<i32>} : memref<8x256xf32, #tpu.memory_space<vmem>>, vector<1x128xf32>,
      %c2_i32_13 = arith.constant 2 : i32
      %19 = arith.muli %11, %c2_i32_13 : i32
      %c1_i32 = arith.constant 1 : i32
      %20 = arith.addi %19, %c1_i32 : i32
      %21 = arith.index_cast %20 : i32 to index
      %22 = memref.load %arg2[%21] : memref<16xi32, #tpu.memory_space<smem>>
      %23 = arith.index_cast %22 : i32 to index
      %c0_14 = arith.constant 0 : index
      %24 = vector.load %arg3[%23, %c0_14] : memref<128x128xf32, #tpu.memory_space<vmem>>, vector<1x128xf32>
      %c0_15 = arith.constant 0 : index
      %c128 = arith.constant 128 : index
      %25 = vector.load %arg9[%c0_15, %c128] : memref<8x256xf32, #tpu.memory_space<vmem>>, vector<1x128xf32>
      tpu.vector_store %arg9[%c0_15, %c128], %24 {strides = array<i32>} : memref<8x256xf32, #tpu.memory_space<vmem>>, vector<1x128xf32>,
      %c8_i32_16 = arith.constant 8 : i32
      %26 = arith.muli %arg0, %c8_i32_16 : i32
      %c1_i32_17 = arith.constant 1 : i32
      %27 = arith.addi %26, %c1_i32_17 : i32
      %c2_i32_18 = arith.constant 2 : i32
      %28 = arith.muli %27, %c2_i32_18 : i32
      %c0_i32_19 = arith.constant 0 : i32
      %29 = arith.addi %28, %c0_i32_19 : i32
      %30 = arith.index_cast %29 : i32 to index
      %31 = memref.load %arg2[%30] : memref<16xi32, #tpu.memory_space<smem>>
      %32 = arith.index_cast %31 : i32 to index
      %c0_20 = arith.constant 0 : index
      %33 = vector.load %arg3[%32, %c0_20] : memref<128x128xf32, #tpu.memory_space<vmem>>, vector<1x128xf32>
      %c1 = arith.constant 1 : index
      %c0_21 = arith.constant 0 : index
      %34 = vector.load %arg9[%c1, %c0_21] : memref<8x256xf32, #tpu.memory_space<vmem>>, vector<1x128xf32>
      tpu.vector_store %arg9[%c1, %c0_21], %33 {strides = array<i32>} : memref<8x256xf32, #tpu.memory_space<vmem>>, vector<1x128xf32>,
      %c2_i32_22 = arith.constant 2 : i32
      %35 = arith.muli %27, %c2_i32_22 : i32
      %c1_i32_23 = arith.constant 1 : i32
      %36 = arith.addi %35, %c1_i32_23 : i32
      %37 = arith.index_cast %36 : i32 to index
      %38 = memref.load %arg2[%37] : memref<16xi32, #tpu.memory_space<smem>>
      %39 = arith.index_cast %38 : i32 to index
      %c0_24 = arith.constant 0 : index
      %40 = vector.load %arg3[%39, %c0_24] : memref<128x128xf32, #tpu.memory_space<vmem>>, vector<1x128xf32>
      %c1_25 = arith.constant 1 : index
      %c128_26 = arith.constant 128 : index
      %41 = vector.load %arg9[%c1_25, %c128_26] : memref<8x256xf32, #tpu.memory_space<vmem>>, vector<1x128xf32>
      tpu.vector_store %arg9[%c1_25, %c128_26], %40 {strides = array<i32>} : memref<8x256xf32, #tpu.memory_space<vmem>>, vector<1x128xf32>,
      %c8_i32_27 = arith.constant 8 : i32
      %42 = arith.muli %arg0, %c8_i32_27 : i32
      %c2_i32_28 = arith.constant 2 : i32
      %43 = arith.addi %42, %c2_i32_28 : i32
      %c2_i32_29 = arith.constant 2 : i32
      %44 = arith.muli %43, %c2_i32_29 : i32
      %c0_i32_30 = arith.constant 0 : i32
      %45 = arith.addi %44, %c0_i32_30 : i32
      %46 = arith.index_cast %45 : i32 to index
      %47 = memref.load %arg2[%46] : memref<16xi32, #tpu.memory_space<smem>>
      %48 = arith.index_cast %47 : i32 to index
      %c0_31 = arith.constant 0 : index
      %49 = vector.load %arg3[%48, %c0_31] : memref<128x128xf32, #tpu.memory_space<vmem>>, vector<1x128xf32>
      %c2 = arith.constant 2 : index
      %c0_32 = arith.constant 0 : index
      %50 = vector.load %arg9[%c2, %c0_32] : memref<8x256xf32, #tpu.memory_space<vmem>>, vector<1x128xf32>
      tpu.vector_store %arg9[%c2, %c0_32], %49 {strides = array<i32>} : memref<8x256xf32, #tpu.memory_space<vmem>>, vector<1x128xf32>,
      %c2_i32_33 = arith.constant 2 : i32
      %51 = arith.muli %43, %c2_i32_33 : i32
      %c1_i32_34 = arith.constant 1 : i32
      %52 = arith.addi %51, %c1_i32_34 : i32
      %53 = arith.index_cast %52 : i32 to index
      %54 = memref.load %arg2[%53] : memref<16xi32, #tpu.memory_space<smem>>
      %55 = arith.index_cast %54 : i32 to index
      %c0_35 = arith.constant 0 : index
      %56 = vector.load %arg3[%55, %c0_35] : memref<128x128xf32, #tpu.memory_space<vmem>>, vector<1x128xf32>
      %c2_36 = arith.constant 2 : index
      %c128_37 = arith.constant 128 : index
      %57 = vector.load %arg9[%c2_36, %c128_37] : memref<8x256xf32, #tpu.memory_space<vmem>>, vector<1x128xf32>
      tpu.vector_store %arg9[%c2_36, %c128_37], %56 {strides = array<i32>} : memref<8x256xf32, #tpu.memory_space<vmem>>, vector<1x128xf32>,
      %c8_i32_38 = arith.constant 8 : i32
      %58 = arith.muli %arg0, %c8_i32_38 : i32
      %c3_i32 = arith.constant 3 : i32
      %59 = arith.addi %58, %c3_i32 : i32
      %c2_i32_39 = arith.constant 2 : i32
      %60 = arith.muli %59, %c2_i32_39 : i32
      %c0_i32_40 = arith.constant 0 : i32
      %61 = arith.addi %60, %c0_i32_40 : i32
      %62 = arith.index_cast %61 : i32 to index
      %63 = memref.load %arg2[%62] : memref<16xi32, #tpu.memory_space<smem>>
      %64 = arith.index_cast %63 : i32 to index
      %c0_41 = arith.constant 0 : index
      %65 = vector.load %arg3[%64, %c0_41] : memref<128x128xf32, #tpu.memory_space<vmem>>, vector<1x128xf32>
      %c3 = arith.constant 3 : index
      %c0_42 = arith.constant 0 : index
      %66 = vector.load %arg9[%c3, %c0_42] : memref<8x256xf32, #tpu.memory_space<vmem>>, vector<1x128xf32>
      tpu.vector_store %arg9[%c3, %c0_42], %65 {strides = array<i32>} : memref<8x256xf32, #tpu.memory_space<vmem>>, vector<1x128xf32>,
      %c2_i32_43 = arith.constant 2 : i32
      %67 = arith.muli %59, %c2_i32_43 : i32
      %c1_i32_44 = arith.constant 1 : i32
      %68 = arith.addi %67, %c1_i32_44 : i32
      %69 = arith.index_cast %68 : i32 to index
      %70 = memref.load %arg2[%69] : memref<16xi32, #tpu.memory_space<smem>>
      %71 = arith.index_cast %70 : i32 to index
      %c0_45 = arith.constant 0 : index
      %72 = vector.load %arg3[%71, %c0_45] : memref<128x128xf32, #tpu.memory_space<vmem>>, vector<1x128xf32>
      %c3_46 = arith.constant 3 : index
      %c128_47 = arith.constant 128 : index
      %73 = vector.load %arg9[%c3_46, %c128_47] : memref<8x256xf32, #tpu.memory_space<vmem>>, vector<1x128xf32>
      tpu.vector_store %arg9[%c3_46, %c128_47], %72 {strides = array<i32>} : memref<8x256xf32, #tpu.memory_space<vmem>>, vector<1x128xf32>,
      %c8_i32_48 = arith.constant 8 : i32
      %74 = arith.muli %arg0, %c8_i32_48 : i32
      %c4_i32 = arith.constant 4 : i32
      %75 = arith.addi %74, %c4_i32 : i32
      %c2_i32_49 = arith.constant 2 : i32
      %76 = arith.muli %75, %c2_i32_49 : i32
      %c0_i32_50 = arith.constant 0 : i32
      %77 = arith.addi %76, %c0_i32_50 : i32
      %78 = arith.index_cast %77 : i32 to index
      %79 = memref.load %arg2[%78] : memref<16xi32, #tpu.memory_space<smem>>
      %80 = arith.index_cast %79 : i32 to index
      %c0_51 = arith.constant 0 : index
      %81 = vector.load %arg3[%80, %c0_51] : memref<128x128xf32, #tpu.memory_space<vmem>>, vector<1x128xf32>
      %c4 = arith.constant 4 : index
      %c0_52 = arith.constant 0 : index
      %82 = vector.load %arg9[%c4, %c0_52] : memref<8x256xf32, #tpu.memory_space<vmem>>, vector<1x128xf32>
      tpu.vector_store %arg9[%c4, %c0_52], %81 {strides = array<i32>} : memref<8x256xf32, #tpu.memory_space<vmem>>, vector<1x128xf32>,
      %c2_i32_53 = arith.constant 2 : i32
      %83 = arith.muli %75, %c2_i32_53 : i32
      %c1_i32_54 = arith.constant 1 : i32
      %84 = arith.addi %83, %c1_i32_54 : i32
      %85 = arith.index_cast %84 : i32 to index
      %86 = memref.load %arg2[%85] : memref<16xi32, #tpu.memory_space<smem>>
      %87 = arith.index_cast %86 : i32 to index
      %c0_55 = arith.constant 0 : index
      %88 = vector.load %arg3[%87, %c0_55] : memref<128x128xf32, #tpu.memory_space<vmem>>, vector<1x128xf32>
      %c4_56 = arith.constant 4 : index
      %c128_57 = arith.constant 128 : index
      %89 = vector.load %arg9[%c4_56, %c128_57] : memref<8x256xf32, #tpu.memory_space<vmem>>, vector<1x128xf32>
      tpu.vector_store %arg9[%c4_56, %c128_57], %88 {strides = array<i32>} : memref<8x256xf32, #tpu.memory_space<vmem>>, vector<1x128xf32>,
      %c8_i32_58 = arith.constant 8 : i32
      %90 = arith.muli %arg0, %c8_i32_58 : i32
      %c5_i32 = arith.constant 5 : i32
      %91 = arith.addi %90, %c5_i32 : i32
      %c2_i32_59 = arith.constant 2 : i32
      %92 = arith.muli %91, %c2_i32_59 : i32
      %c0_i32_60 = arith.constant 0 : i32
      %93 = arith.addi %92, %c0_i32_60 : i32
      %94 = arith.index_cast %93 : i32 to index
      %95 = memref.load %arg2[%94] : memref<16xi32, #tpu.memory_space<smem>>
      %96 = arith.index_cast %95 : i32 to index
      %c0_61 = arith.constant 0 : index
      %97 = vector.load %arg3[%96, %c0_61] : memref<128x128xf32, #tpu.memory_space<vmem>>, vector<1x128xf32>
      %c5 = arith.constant 5 : index
      %c0_62 = arith.constant 0 : index
      %98 = vector.load %arg9[%c5, %c0_62] : memref<8x256xf32, #tpu.memory_space<vmem>>, vector<1x128xf32>
      tpu.vector_store %arg9[%c5, %c0_62], %97 {strides = array<i32>} : memref<8x256xf32, #tpu.memory_space<vmem>>, vector<1x128xf32>,
      %c2_i32_63 = arith.constant 2 : i32
      %99 = arith.muli %91, %c2_i32_63 : i32
      %c1_i32_64 = arith.constant 1 : i32
      %100 = arith.addi %99, %c1_i32_64 : i32
      %101 = arith.index_cast %100 : i32 to index
      %102 = memref.load %arg2[%101] : memref<16xi32, #tpu.memory_space<smem>>
      %103 = arith.index_cast %102 : i32 to index
      %c0_65 = arith.constant 0 : index
      %104 = vector.load %arg3[%103, %c0_65] : memref<128x128xf32, #tpu.memory_space<vmem>>, vector<1x128xf32>
      %c5_66 = arith.constant 5 : index
      %c128_67 = arith.constant 128 : index
      %105 = vector.load %arg9[%c5_66, %c128_67] : memref<8x256xf32, #tpu.memory_space<vmem>>, vector<1x128xf32>
      tpu.vector_store %arg9[%c5_66, %c128_67], %104 {strides = array<i32>} : memref<8x256xf32, #tpu.memory_space<vmem>>, vector<1x128xf32>,
      %c8_i32_68 = arith.constant 8 : i32
      %106 = arith.muli %arg0, %c8_i32_68 : i32
      %c6_i32 = arith.constant 6 : i32
      %107 = arith.addi %106, %c6_i32 : i32
      %c2_i32_69 = arith.constant 2 : i32
      %108 = arith.muli %107, %c2_i32_69 : i32
      %c0_i32_70 = arith.constant 0 : i32
      %109 = arith.addi %108, %c0_i32_70 : i32
      %110 = arith.index_cast %109 : i32 to index
      %111 = memref.load %arg2[%110] : memref<16xi32, #tpu.memory_space<smem>>
      %112 = arith.index_cast %111 : i32 to index
      %c0_71 = arith.constant 0 : index
      %113 = vector.load %arg3[%112, %c0_71] : memref<128x128xf32, #tpu.memory_space<vmem>>, vector<1x128xf32>
      %c6 = arith.constant 6 : index
      %c0_72 = arith.constant 0 : index
      %114 = vector.load %arg9[%c6, %c0_72] : memref<8x256xf32, #tpu.memory_space<vmem>>, vector<1x128xf32>
      tpu.vector_store %arg9[%c6, %c0_72], %113 {strides = array<i32>} : memref<8x256xf32, #tpu.memory_space<vmem>>, vector<1x128xf32>,
      %c2_i32_73 = arith.constant 2 : i32
      %115 = arith.muli %107, %c2_i32_73 : i32
      %c1_i32_74 = arith.constant 1 : i32
      %116 = arith.addi %115, %c1_i32_74 : i32
      %117 = arith.index_cast %116 : i32 to index
      %118 = memref.load %arg2[%117] : memref<16xi32, #tpu.memory_space<smem>>
      %119 = arith.index_cast %118 : i32 to index
      %c0_75 = arith.constant 0 : index
      %120 = vector.load %arg3[%119, %c0_75] : memref<128x128xf32, #tpu.memory_space<vmem>>, vector<1x128xf32>
      %c6_76 = arith.constant 6 : index
      %c128_77 = arith.constant 128 : index
      %121 = vector.load %arg9[%c6_76, %c128_77] : memref<8x256xf32, #tpu.memory_space<vmem>>, vector<1x128xf32>
      tpu.vector_store %arg9[%c6_76, %c128_77], %120 {strides = array<i32>} : memref<8x256xf32, #tpu.memory_space<vmem>>, vector<1x128xf32>,
      %c8_i32_78 = arith.constant 8 : i32
      %122 = arith.muli %arg0, %c8_i32_78 : i32
      %c7_i32 = arith.constant 7 : i32
      %123 = arith.addi %122, %c7_i32 : i32
      %c2_i32_79 = arith.constant 2 : i32
      %124 = arith.muli %123, %c2_i32_79 : i32
      %c0_i32_80 = arith.constant 0 : i32
      %125 = arith.addi %124, %c0_i32_80 : i32
      %126 = arith.index_cast %125 : i32 to index
      %127 = memref.load %arg2[%126] : memref<16xi32, #tpu.memory_space<smem>>
      %128 = arith.index_cast %127 : i32 to index
      %c0_81 = arith.constant 0 : index
      %129 = vector.load %arg3[%128, %c0_81] : memref<128x128xf32, #tpu.memory_space<vmem>>, vector<1x128xf32>
      %c7 = arith.constant 7 : index
      %c0_82 = arith.constant 0 : index
      %130 = vector.load %arg9[%c7, %c0_82] : memref<8x256xf32, #tpu.memory_space<vmem>>, vector<1x128xf32>
      tpu.vector_store %arg9[%c7, %c0_82], %129 {strides = array<i32>} : memref<8x256xf32, #tpu.memory_space<vmem>>, vector<1x128xf32>,
      %c2_i32_83 = arith.constant 2 : i32
      %131 = arith.muli %123, %c2_i32_83 : i32
      %c1_i32_84 = arith.constant 1 : i32
      %132 = arith.addi %131, %c1_i32_84 : i32
      %133 = arith.index_cast %132 : i32 to index
      %134 = memref.load %arg2[%133] : memref<16xi32, #tpu.memory_space<smem>>
      %135 = arith.index_cast %134 : i32 to index
      %c0_85 = arith.constant 0 : index
      %136 = vector.load %arg3[%135, %c0_85] : memref<128x128xf32, #tpu.memory_space<vmem>>, vector<1x128xf32>
      %c7_86 = arith.constant 7 : index
      %c128_87 = arith.constant 128 : index
      %137 = vector.load %arg9[%c7_86, %c128_87] : memref<8x256xf32, #tpu.memory_space<vmem>>, vector<1x128xf32>
      tpu.vector_store %arg9[%c7_86, %c128_87], %136 {strides = array<i32>} : memref<8x256xf32, #tpu.memory_space<vmem>>, vector<1x128xf32>,
      %c0_88 = arith.constant 0 : index
      %c0_89 = arith.constant 0 : index
      %138 = vector.load %arg9[%c0_88, %c0_89] : memref<8x256xf32, #tpu.memory_space<vmem>>, vector<8x256xf32>
      %139 = arith.truncf %138 : vector<8x256xf32> to vector<8x256xbf16>
      %c0_90 = arith.constant 0 : index
      %c0_91 = arith.constant 0 : index
      %140 = vector.load %arg4[%c0_90, %c0_91] : memref<256x128xbf16, #tpu.memory_space<vmem>>, vector<256x128xbf16>
      %cst_92 = arith.constant dense<0.000000e+00> : vector<8x128xf32>
      %141 = tpu.matmul %139, %140, %cst_92 {dimension_numbers = #tpu.dot_dimension_numbers<[1], [0], [0], [1], [0, 0, 1, 1], [], []>} : vector<8x256xbf16>, vector<256x128xbf16>, vector<8x128xf32> -> vector<8x128xf32>
      %c0_93 = arith.constant 0 : index
      %c0_94 = arith.constant 0 : index
      %142 = vector.load %arg5[%c0_93, %c0_94] : memref<1x128xf32, #tpu.memory_space<vmem>>, vector<1x128xf32>
      %143 = vector.broadcast %142 : vector<1x128xf32> to vector<8x128xf32>
      %144 = arith.addf %141, %143 : vector<8x128xf32>
      %cst_95 = arith.constant 0.000000e+00 : f32
      %145 = vector.broadcast %cst_95 : f32 to vector<8x128xf32>
      %146 = arith.maximumf %144, %145 : vector<8x128xf32>
      %147 = arith.truncf %146 : vector<8x128xf32> to vector<8x128xbf16>
      %c0_96 = arith.constant 0 : index
      %c0_97 = arith.constant 0 : index
      %148 = vector.load %arg10[%c0_96, %c0_97] : memref<8x128xbf16, #tpu.memory_space<vmem>>, vector<8x128xbf16>
      tpu.vector_store %arg10[%c0_96, %c0_97], %147 {strides = array<i32>} : memref<8x128xbf16, #tpu.memory_space<vmem>>, vector<8x128xbf16>,
    } else {
    }
    %c0 = arith.constant 0 : index
    %c0_1 = arith.constant 0 : index
    %3 = vector.load %arg10[%c0, %c0_1] : memref<8x128xbf16, #tpu.memory_space<vmem>>, vector<8x128xbf16>
    %c0_2 = arith.constant 0 : index
    %c0_3 = arith.constant 0 : index
    %4 = vector.load %arg6[%c0_2, %c0_3] : memref<128x128xbf16, #tpu.memory_space<vmem>>, vector<128x128xbf16>
    %cst = arith.constant dense<0.000000e+00> : vector<8x128xf32>
    %5 = tpu.matmul %3, %4, %cst {dimension_numbers = #tpu.dot_dimension_numbers<[1], [0], [0], [1], [0, 0, 1, 1], [], []>} : vector<8x128xbf16>, vector<128x128xbf16>, vector<8x128xf32> -> vector<8x128xf32>
    %c0_4 = arith.constant 0 : index
    %c0_5 = arith.constant 0 : index
    %6 = vector.load %arg7[%c0_4, %c0_5] : memref<1x128xf32, #tpu.memory_space<vmem>>, vector<1x128xf32>
    %7 = vector.broadcast %6 : vector<1x128xf32> to vector<8x128xf32>
    %8 = arith.addf %5, %7 : vector<8x128xf32>
    %c0_6 = arith.constant 0 : index
    %c0_7 = arith.constant 0 : index
    %9 = vector.load %arg8[%c0_6, %c0_7] : memref<8x128xf32, #tpu.memory_space<vmem>>, vector<8x128xf32>
    tpu.vector_store %arg8[%c0_6, %c0_7], %8 {strides = array<i32>} : memref<8x128xf32, #tpu.memory_space<vmem>>, vector<8x128xf32>,
    return
  }
  func.func @transform_0(%arg0: i32, %arg1: i32, %arg2: memref<16xi32, #tpu.memory_space<smem>>) -> (i32, i32) {
    %c0_i32 = arith.constant 0 : i32
    %c0_i32_0 = arith.constant 0 : i32
    %c0_i32_1 = arith.constant 0 : i32
    return %c0_i32, %c0_i32_0 : i32, i32
  }
  func.func @transform_1(%arg0: i32, %arg1: i32, %arg2: memref<16xi32, #tpu.memory_space<smem>>) -> (i32, i32) {
    %c0_i32 = arith.constant 0 : i32
    %c0_i32_0 = arith.constant 0 : i32
    %c0_i32_1 = arith.constant 0 : i32
    return %c0_i32, %c0_i32_0 : i32, i32
  }
  func.func @transform_2(%arg0: i32, %arg1: i32, %arg2: memref<16xi32, #tpu.memory_space<smem>>) -> (i32, i32) {
    %c0_i32 = arith.constant 0 : i32
    %c0_i32_0 = arith.constant 0 : i32
    %c0_i32_1 = arith.constant 0 : i32
    return %c0_i32, %c0_i32_0 : i32, i32
  }
  func.func @transform_3(%arg0: i32, %arg1: i32, %arg2: memref<16xi32, #tpu.memory_space<smem>>) -> (i32, i32) {
    %c0_i32 = arith.constant 0 : i32
    %c0_i32_0 = arith.constant 0 : i32
    return %c0_i32, %arg1 : i32, i32
  }
  func.func @transform_4(%arg0: i32, %arg1: i32, %arg2: memref<16xi32, #tpu.memory_space<smem>>) -> (i32, i32) {
    %c0_i32 = arith.constant 0 : i32
    %c0_i32_0 = arith.constant 0 : i32
    return %c0_i32, %arg1 : i32, i32
  }
  func.func @transform_5(%arg0: i32, %arg1: i32, %arg2: memref<16xi32, #tpu.memory_space<smem>>) -> (i32, i32) {
    %c0_i32 = arith.constant 0 : i32
    return %arg0, %arg1 : i32, i32
  }
}

</mosaic_0001>

<bundles_post_ra>
// kernel: tpu_custom_call.1
= control target key start
LH: loop header
LB: loop body
LE: loop exit
PB: predicated region body
PF: predicated region fallthrough
CT: control target
= control target key end

     0   :  { %s883_s0 = inlined_call_operand.hbm [shape: s32[16], index: 0, kind: input, shape index: {}]   ;;  %s884_s1 = inlined_call_operand.hbm [shape: f32[128,128], index: 1, kind: input, shape index: {}]   ;;  %s885_s2 = inlined_call_operand.hbm [shape: bf16[256,128], index: 2, kind: input, shape index: {}]   ;;  %s886_s3 = inlined_call_operand.vmem [shape: f32[1,128], index: 3, kind: input, shape index: {}]   ;;  %s887_s4 = inlined_call_operand.hbm [shape: bf16[128,128], index: 4, kind: input, shape index: {}]   ;;  %s888_s5 = inlined_call_operand.vmem [shape: f32[1,128], index: 5, kind: input, shape index: {}]   ;;  %s889_s6 = inlined_call_operand.hbm [shape: f32[8,128], index: 6, kind: output, shape index: {}]  }
   0x1   :  { %s614_s23 = scalar_lea.hbm %s883_s0, 16 }
   0x2   :  { %p615_p0 = scmp.ne.s32.totalorder %s883_s0, %s614_s23  ;;  %p618_p1 = scmp.lt.u32.totalorder %s614_s23, %s883_s0 }
   0x4   :  { %p620_p2 = pnand %p618_p1, %p615_p0 }
   0x6   :  { %623 = shalt.err (!%p620_p2)  }
   0x7   :  { %s720_s28 = smov [#allocation5]  }
   0x8   :  { %12 = dma.hbm_to_smem %s883_s0, 16, %s720_s28, [#allocation4] }
   0x9   :  { %712 = dma.done.wait [#allocation4], 16 }
   0xa   :  { %713 = vsyncadd [#allocation4], 4294967280 }
   0xb   :  { %14 = sfence }
   0xc   :  { %15 = vsyncpa [#allocation7], 0 }
   0xd   :  { %16 = vsyncpa [#allocation10], 0 }
   0xe   :  { %17 = vsyncpa [#allocation8], 0  ;;  %s721_s7 = smov [#allocation9]   ;;  %s624_s11 = scalar_lea.hbm %s885_s2, 2048 }
   0xf   :  { %s35_s8 = sshll.u32 %s721_s7, 4  ;;  %p625_p3 = scmp.ne.s32.totalorder %s885_s2, %s624_s11  ;;  %s36_s8 = int_to_ptr.vmem [resolvable:$true] %s35_s8 }
  0x10   :  { %p628_p4 = scmp.lt.u32.totalorder %s624_s11, %s885_s2 }
  0x12   :  { %p630_p5 = pnand %p628_p4, %p625_p3 }
  0x14   :  { %633 = shalt.err (!%p630_p5)
}
  0x15   :  { %s634_s0 = scalar_lea.vmem %s36_s8, 2048  ;;  %p639_p7 = scmp.lt.s32.totalorder %s36_s8, %s36_s8 }
  0x16   :  { %p635_p6 = scmp.ne.s32.totalorder %s36_s8, %s634_s0  ;;  %p640_p8 = scmp.lt.s32.totalorder %s634_s0, %s634_s0 }
  0x18   :  { %p641_p9 = por %p640_p8, %p639_p7 }
  0x1a   :  { %p642_p10 = pnand %p641_p9, %p635_p6 }
  0x1c   :  { %645 = shalt.err (!%p642_p10)
}
  0x1d   :  { %s722_s16 = smov 64   ;;  %s723_s17 = smov 4  }
  0x1e   :  { %41 = dma.hbm_to_vmem [thread:$0]  %s885_s2, 2048, %s36_s8, [#allocation10], %s722_s16, %s722_s16, %s723_s17  }
  0x1f   :  { %s724_s20 = smov [#allocation6]   ;;  %s646_s24 = scalar_lea.hbm %s884_s1, 2048 }
  0x20   :  { %s23_s21 = sshll.u32 %s724_s20, 4  ;;  %p647_p11 = scmp.ne.s32.totalorder %s884_s1, %s646_s24  ;;  %s24_s21 = int_to_ptr.vmem [resolvable:$true] %s23_s21 }
  0x21   :  { %p650_p12 = scmp.lt.u32.totalorder %s646_s24, %s884_s1 }
  0x23   :  { %p652_p13 = pnand %p650_p12, %p647_p11 }
  0x25   :  { %655 = shalt.err (!%p652_p13)
}
  0x26   :  { %s656_s29 = scalar_lea.vmem %s24_s21, 2048  ;;  %p661_p1 = scmp.lt.s32.totalorder %s24_s21, %s24_s21 }
  0x27   :  { %p657_p0 = scmp.ne.s32.totalorder %s24_s21, %s656_s29  ;;  %p662_p2 = scmp.lt.s32.totalorder %s656_s29, %s656_s29 }
  0x29   :  { %p663_p3 = por %p662_p2, %p661_p1 }
  0x2b   :  { %p664_p4 = pnand %p663_p3, %p657_p0 }
  0x2d   :  { %667 = shalt.err (!%p664_p4)
}
  0x2e   :  { %s725_s2 = smov 128   ;;  %s726_s30 = smov 8  }
  0x2f   :  { %29 = dma.hbm_to_vmem [thread:$0]  %s884_s1, 2048, %s24_s21, [#allocation7], %s725_s2, %s725_s2, %s726_s30  }
  0x30   :  { %s727_s9 = smov [#allocation11]   ;;  %s668_s13 = scalar_lea.hbm %s887_s4, 1024 }
  0x31   :  { %s49_s10 = sshll.u32 %s727_s9, 4  ;;  %p669_p5 = scmp.ne.s32.totalorder %s887_s4, %s668_s13  ;;  %s50_s10 = int_to_ptr.vmem [resolvable:$true] %s49_s10 }
  0x32   :  { %p672_p6 = scmp.lt.u32.totalorder %s668_s13, %s887_s4 }
  0x34   :  { %p674_p7 = pnand %p672_p6, %p669_p5 }
  0x36   :  { %677 = shalt.err (!%p674_p7)
}
  0x37   :  { %s678_s19 = scalar_lea.vmem %s50_s10, 1024  ;;  %p683_p9 = scmp.lt.s32.totalorder %s50_s10, %s50_s10 }
  0x38   :  { %p679_p8 = scmp.ne.s32.totalorder %s50_s10, %s678_s19  ;;  %p684_p10 = scmp.lt.s32.totalorder %s678_s19, %s678_s19 }
  0x3a   :  { %p685_p11 = por %p684_p10, %p683_p9 }
  0x3c   :  { %p686_p12 = pnand %p685_p11, %p679_p8 }
  0x3e   :  { %689 = shalt.err (!%p686_p12)
}
  0x3f   :  { %55 = dma.hbm_to_vmem [thread:$0]  %s887_s4, 1024, %s50_s10, [#allocation10], %s722_s16, %s722_s16, %s723_s17  }
  0x40   :  { %714 = dma.done.wait [#allocation7], 2048  }
  0x41   :  { %715 = vsyncadd [#allocation7], 4294965248 }
  0x42   :  { %716 = dma.done.wait [#allocation10], 3072  }
  0x43   :  { %717 = vsyncadd [#allocation10], 4294964224  ;;  %v728_v0 = vmov 0.0   ;;  %s821_s21 = sld [smem:[#allocation5 + $0x1]]  ;;  %s823_s22 = sld [smem:[#allocation5 + $0x3]]  ;;  %v590_v1 = vld [vmem:[#allocation9 + $0x40] sm:$0xff]  }
  0x44   :  { %559 = vmatprep.subr.bf16.mxu1 %v728_v0  ;;  %s825_s23 = sld [smem:[#allocation5 + $0x5]]  ;;  %s827_s24 = sld [smem:[#allocation5 + $0x7]]  ;;  %v591_v2 = vld [vmem:[#allocation9] sm:$0xff]   ;;  %528 = vmatprep.subr.bf16.mxu0 %v590_v1  ;;  %v592_v3 = vld [vmem:[#allocation9 + $0x48] sm:$0xff]   ;;  %v594_v5 = vld [vmem:[#allocation9 + $0x50] sm:$0xff]   ;;  %vm729_vm0 = vmmov 0  }
  0x45   :  { %s829_s25 = sld [smem:[#allocation5 + $0x9]]  ;;  %s831_s26 = sld [smem:[#allocation5 + $0xb]]  ;;  %529 = vmatpush3.bf16.msra.mxu0 %v591_v2  ;;  %v593_v4 = vld [vmem:[#allocation9 + $0x8] sm:$0xff]   ;;  %v595_v6 = vld [vmem:[#allocation9 + $0x10] sm:$0xff]   ;;  %v596_v7 = vld [vmem:[#allocation9 + $0x58] sm:$0xff]   ;;  %575 = vmatprep.mubr.msk.bf16.mxu1 %vm729_vm0, %v728_v0 }
  0x46   :  { %s833_s4 = sld [smem:[#allocation5 + $0xd]]  ;;  %s835_s16 = sld [smem:[#allocation5 + $0xf]]  ;;  %530 = vmatprep.subr.bf16.mxu0 %v592_v3  ;;  %v597_v8 = vld [vmem:[#allocation9 + $0x18] sm:$0xff]   ;;  %v598_v9 = vld [vmem:[#allocation9 + $0x60] sm:$0xff]   ;;  %v600_v11 = vld [vmem:[#allocation9 + $0x68] sm:$0xff]  }
  0x47   :  { %s837_s17 = sld [smem:[#allocation5]]  ;;  %s839_s27 = sld [smem:[#allocation5 + $0x2]]  ;;  %v599_v10 = vld [vmem:[#allocation9 + $0x20] sm:$0xff]   ;;  %v601_v15 = vld [vmem:[#allocation9 + $0x28] sm:$0xff]   ;;  %v602_v19 = vld [vmem:[#allocation9 + $0x70] sm:$0xff]  }
  0x48   :  { %s841_s28 = sld [smem:[#allocation5 + $0x4]]  ;;  %s843_s29 = sld [smem:[#allocation5 + $0x6]]  ;;  %v603_v26 = vld [vmem:[#allocation9 + $0x30] sm:$0xff]   ;;  %v606_v27 = vld [vmem:[#allocation11] sm:$0xff]   ;;  %v604_v28 = vld [vmem:[#allocation9 + $0x78] sm:$0xff]  }
  0x49   :  { %531 = vmatpush3.bf16.msra.mxu0 %v593_v4  ;;  %s79_s2 = scalar_lea.vmem [#allocation6], %s821_s21  ;;  %s91_s30 = scalar_lea.vmem [#allocation6], %s823_s22  ;;  %560 = vmatpush3.bf16.msra.mxu1 %v606_v27  ;;  %v607_v29 = vld [vmem:[#allocation11 + $0x8] sm:$0xff]   ;;  %v605_v30 = vld [vmem:[#allocation9 + $0x38] sm:$0xff]   ;;  %v608_v32 = vld [vmem:[#allocation11 + $0x10] sm:$0xff]  }
  0x4a   :  { %532 = vmatprep.subr.bf16.mxu0 %v594_v5  ;;  %v80_v12 = vld [vmem:[%s79_s2] sm:$0x1]  ;;  %s102_s7 = scalar_lea.vmem [#allocation6], %s825_s23  ;;  %s113_s8 = scalar_lea.vmem [#allocation6], %s827_s24  ;;  %561 = vmatprep.subr.bf16.mxu1 %v728_v0  ;;  %v609_v38 = vld [vmem:[#allocation11 + $0x18] sm:$0xff]   ;;  %v610_v41 = vld [vmem:[#allocation11 + $0x20] sm:$0xff]  }
  0x4b   :  { %v92_v13 = vld [vmem:[%s91_s30] sm:$0x1]  ;;  %81 = vst [vmem:[#allocation2 + $0x8] sm:$0x1] %v80_v12  ;;  %s124_s9 = scalar_lea.vmem [#allocation6], %s829_s25  ;;  %s135_s10 = scalar_lea.vmem [#allocation6], %s831_s26 }
  0x4c   :  { %v103_v14 = vld [vmem:[%s102_s7] sm:$0x1]  ;;  %93 = vst [vmem:[#allocation2 + $0x9] sm:$0x1] %v92_v13  ;;  %s146_s11 = scalar_lea.vmem [#allocation6], %s833_s4  ;;  %s157_s12 = scalar_lea.vmem [#allocation6], %s835_s16 }
  0x4d   :  { %533 = vmatpush3.bf16.msra.mxu0 %v595_v6  ;;  %104 = vst [vmem:[#allocation2 + $0xa] sm:$0x1] %v103_v14  ;;  %v114_v16 = vld [vmem:[%s113_s8] sm:$0x1]  ;;  %s74_s13 = scalar_lea.vmem [#allocation6], %s837_s17  ;;  %s86_s14 = scalar_lea.vmem [#allocation6], %s839_s27  ;;  %562 = vmatpush3.bf16.msra.mxu1 %v607_v29 }
  0x4e   :  { %534 = vmatprep.subr.bf16.mxu0 %v596_v7  ;;  %v125_v17 = vld [vmem:[%s124_s9] sm:$0x1]  ;;  %115 = vst [vmem:[#allocation2 + $0xb] sm:$0x1] %v114_v16  ;;  %s97_s15 = scalar_lea.vmem [#allocation6], %s841_s28  ;;  %s108_s0 = scalar_lea.vmem [#allocation6], %s843_s29  ;;  %563 = vmatprep.subr.bf16.mxu1 %v728_v0 }
  0x4f   :  { %v136_v18 = vld [vmem:[%s135_s10] sm:$0x1]  ;;  %126 = vst [vmem:[#allocation2 + $0xc] sm:$0x1] %v125_v17  ;;  %s494_s18 = sld [smem:[#allocation5 + $0x8]]  ;;  %s496_s19 = sld [smem:[#allocation5 + $0xa]] }
  0x50   :  { %137 = vst [vmem:[#allocation2 + $0xd] sm:$0x1] %v136_v18  ;;  %v147_v20 = vld [vmem:[%s146_s11] sm:$0x1]  ;;  %s498_s1 = sld [smem:[#allocation5 + $0xc]]  ;;  %s500_s20 = sld [smem:[#allocation5 + $0xe]] }
  0x51   :  { %535 = vmatpush3.bf16.msra.mxu0 %v597_v8  ;;  %v158_v21 = vld [vmem:[%s157_s12] sm:$0x1]  ;;  %148 = vst [vmem:[#allocation2 + $0xe] sm:$0x1] %v147_v20  ;;  %564 = vmatpush3.bf16.msra.mxu1 %v608_v32  ;;  %v612_v43 = vld [vmem:[#allocation11 + $0x30] sm:$0xff]   ;;  %v613_v44 = vld [vmem:[#allocation11 + $0x38] sm:$0xff]  }
  0x52   :  { %536 = vmatprep.subr.bf16.mxu0 %v598_v9  ;;  %v75_v22 = vld [vmem:[%s74_s13] sm:$0x1]  ;;  %159 = vst [vmem:[#allocation2 + $0xf] sm:$0x1] %v158_v21  ;;  %565 = vmatprep.subr.bf16.mxu1 %v728_v0  ;;  %s730_s17 = smov [#allocation12]  }
  0x53   :  { %76 = vst [vmem:[#allocation2] sm:$0x1] %v75_v22  ;;  %v87_v23 = vld [vmem:[%s86_s14] sm:$0x1]  ;;  %s461_s27 = sshll.u32 %s730_s17, 4  ;;  %s462_s27 = int_to_ptr.vmem [resolvable:$true] %s461_s27 }
  0x54   :  { %v98_v24 = vld [vmem:[%s97_s15] sm:$0x1]  ;;  %88 = vst [vmem:[#allocation2 + $0x1] sm:$0x1] %v87_v23  ;;  %p695_p0 = scmp.lt.s32.totalorder %s462_s27, %s462_s27 }
  0x55   :  { %537 = vmatpush3.bf16.msra.mxu0 %v599_v10  ;;  %v109_v25 = vld [vmem:[%s108_s0] sm:$0x1]  ;;  %99 = vst [vmem:[#allocation2 + $0x2] sm:$0x1] %v98_v24  ;;  %s119_s21 = scalar_lea.vmem [#allocation6], %s494_s18  ;;  %s130_s22 = scalar_lea.vmem [#allocation6], %s496_s19  ;;  %566 = vmatpush3.bf16.msra.mxu1 %v609_v38 }
  0x56   :  { %538 = vmatprep.subr.bf16.mxu0 %v600_v11  ;;  %110 = vst [vmem:[#allocation2 + $0x3] sm:$0x1] %v109_v25  ;;  %v120_v34 = vld [vmem:[%s119_s21] sm:$0x1]  ;;  %s141_s23 = scalar_lea.vmem [#allocation6], %s498_s1  ;;  %s152_s24 = scalar_lea.vmem [#allocation6], %s500_s20  ;;  %567 = vmatprep.subr.bf16.mxu1 %v728_v0 }
  0x57   :  { %v131_v35 = vld [vmem:[%s130_s22] sm:$0x1]  ;;  %121 = vst [vmem:[#allocation2 + $0x4] sm:$0x1] %v120_v34 }
  0x58   :  { %132 = vst [vmem:[#allocation2 + $0x5] sm:$0x1] %v131_v35  ;;  %v142_v36 = vld [vmem:[%s141_s23] sm:$0x1] }
  0x59   :  { %539 = vmatpush3.bf16.msra.mxu0 %v601_v15  ;;  %v161_v31 = vld [vmem:[#allocation2 + $0x8] sm:$0xff]  ;;  %v153_v37 = vld [vmem:[%s152_s24] sm:$0x1]  ;;  %143 = vst [vmem:[#allocation2 + $0x6] sm:$0x1] %v142_v36  ;;  %568 = vmatpush3.bf16.msra.mxu1 %v610_v41 }
  0x5a   :  { %540 = vmatprep.subr.bf16.mxu0 %v602_v19  ;;  %v163_v33 = vpack.c.bf16 %v161_v31, %v161_v31  ;;  %154 = vst [vmem:[#allocation2 + $0x7] sm:$0x1] %v153_v37  ;;  %569 = vmatprep.subr.bf16.mxu1 %v728_v0  ;;  %v611_v42 = vld [vmem:[#allocation11 + $0x28] sm:$0xff]  }
  0x5b   :  { %v502_v46 = vld [vmem:[%s886_s3] ss:$0 sm:$0xff]  ;;  %s690_s3 = scalar_lea.vmem %s462_s27, 128 }
  0x5c   :  { %331 = vmatprep.mubr.bf16.mxu0 %v163_v33  ;;  %v519_v55 = vld [vmem:[%s888_s5] ss:$0 sm:$0xff]  ;;  %p691_p13 = scmp.ne.s32.totalorder %s462_s27, %s690_s3  ;;  %p696_p1 = scmp.lt.s32.totalorder %s690_s3, %s690_s3 }
  0x5d   :  { %541 = vmatpush3.bf16.msra.mxu0 %v603_v26  ;;  %570 = vmatpush3.bf16.msra.mxu1 %v611_v42 }
  0x5e   :  { %542 = vmatprep.subr.bf16.mxu0 %v604_v28  ;;  %571 = vmatprep.subr.bf16.mxu1 %v728_v0  ;;  %p697_p2 = por %p696_p1, %p695_p0 }
  0x60   :  { %p698_p3 = pnand %p697_p2, %p691_p13 }
  0x61   :  { %543 = vmatpush3.bf16.msra.mxu0 %v605_v30  ;;  %v160_v39 = vld [vmem:[#allocation2] sm:$0xff]  ;;  %572 = vmatpush3.bf16.msra.mxu1 %v612_v43 }
  0x62   :  { %v162_v40 = vpack.c.bf16 %v160_v39, %v160_v39  ;;  %573 = vmatprep.subr.bf16.mxu1 %v728_v0 }
  0x64   :  { %332 = vmatmul.mubr.bf16.vlgmr.msra.gmra.mrb[0].mxu0 %v162_v40 }
  0x65   :  { %574 = vmatpush3.bf16.msra.mxu1 %v613_v44 }
 0x137   :  { %v544_v45 = vpop.f32.mrb[0].mxu0 }
 0x138   :  { %v545_v47 = vpop.f32.mrb[1].mxu0 }
 0x139   :  { %v546_v48 = vadd.f32 %v545_v47, %v544_v45  ;;  %v547_v49 = vpop.f32.mrb[2].mxu0 }
 0x13a   :  { %v548_v50 = vpop.f32.mrb[3].mxu0 }
 0x13b   :  { %v334_v51 = vadd.f32 %v546_v48, %v502_v46 }
 0x13d   :  { %v339_v52 = vmax.f32 %v334_v51, 0.0 }
 0x13f   :  { %v340_v53 = vpack.c.bf16 %v339_v52, %v339_v52 }
 0x141   :  { %341 = vst [vmem:[#allocation3] sm:$0xf] %v340_v53 }
 0x148   :  { %v342_v54 = vld [vmem:[#allocation3] sm:$0xf] }
 0x149   :  { %576 = vmatmul.mubr.bf16.vlgmr.msra.gmra.mrb[0].mxu1 %v342_v54 }
 0x21c   :  { %v448_v56 = vpop.f32.mrb[0].mxu1 }
 0x21d   :  { %v449_v57 = vadd.f32 %v519_v55, %v448_v56  ;;  %v577_v58 = vpop.f32.mrb[1].mxu1 }
 0x21e   :  { %v451_v59 = vpop.f32.mrb[2].mxu1 }
 0x21f   :  { %454 = vst [vmem:[#allocation12] sm:$0xff] %v449_v57  ;;  %v578_v60 = vpop.f32.mrb[3].mxu1 }
 0x220   :  { %701 = shalt.err (!%p698_p3)
}
 0x221   :  { %s702_s5 = scalar_lea.hbm %s889_s6, 128 }
 0x222   :  { %p703_p4 = scmp.ne.s32.totalorder %s889_s6, %s702_s5  ;;  %p706_p5 = scmp.lt.u32.totalorder %s702_s5, %s889_s6 }
 0x224   :  { %p708_p6 = pnand %p706_p5, %p703_p4 }
 0x226   :  { %711 = shalt.err (!%p708_p6)
}
 0x227   :  { %464 = dma.vmem_to_hbm [thread:$0]  %s462_s27, 128, %s889_s6, [#allocation8]  }
 0x228   :  { %718 = dma.done.wait [#allocation8], 128  }
 0x229   :  { %719 = vsyncadd [#allocation8], 4294967168 }
 0x22a   :  { %468 = vsyncpa [#allocation7], 1 }
 0x22b   :  { %469 = vsyncpa [#allocation10], 1 }
 0x22c   :  { %470 = vsyncpa [#allocation8], 1 }

</bundles_post_ra>
